<compile_context>
chip_gen: v5e
topology: v5e:2x2
jax: 0.10.0
libtpu: 0.0.40
codegen_flags: <defaults>
</compile_context>

<pallas_src>
import numpy as np
import jax
import jax.numpy as jnp
from jax import lax
from jax.experimental import pallas as pl
from jax.experimental.pallas import tpu as pltpu


# ----------------------------------------------------------------------------
# Constant builders (host-side, run once at module construction)
# ----------------------------------------------------------------------------
def _build_wide_conv_weight(w_hwio, w_in_pad, w_out):
    """w_hwio: (3,3,Cin,Cout) -> (3, w_in_pad*Cin, w_out*Cout) banded matrices.

    For row-offset kh the conv over (kw, ci) becomes a single matmul:
      out[h, w*Cout+co] += sum_{pw,ci} X[h+kh, pw*Cin+ci] * Wb[kh][pw*Cin+ci, w*Cout+co]
    with Wb[kh][(w+kw)*Cin+ci, w*Cout+co] = w[kh, kw, ci, co].
    """
    kh_n, kw_n, cin, cout = w_hwio.shape
    out = np.zeros((kh_n, w_in_pad * cin, w_out * cout), np.float32)
    for kh in range(kh_n):
        for kw in range(kw_n):
            for wo in range(w_out):
                pw = wo + kw
                out[kh, pw * cin:(pw + 1) * cin, wo * cout:(wo + 1) * cout] = \
                    w_hwio[kh, kw]
    return out


def _build_pool_row_select(h_in, h_out, pad, n_rows):
    """(2, n_rows, h_in) 0/1 matrices selecting rows 2i+d (d=0,1) of a 2x2 pool.

    Rows outside [pad, pad+h_out) are all-zero, which simultaneously provides
    the zero padding required by the next conv block.  n_rows is padded to a
    multiple of 8 for friendly tiling.
    """
    sel = np.zeros((2, n_rows, h_in), np.float32)
    for d in range(2):
        for i in range(h_out):
            sel[d, i + pad, 2 * i + d] = 1.0
    return sel


def _build_pool_col_select(w_in, w_out, c, pad):
    """(2, w_in*c, (w_out+2*pad)*c) 0/1 matrices selecting cols (2j+e)*c+ch."""
    sel = np.zeros((2, w_in * c, (w_out + 2 * pad) * c), np.float32)
    for e in range(2):
        for j in range(w_out):
            for ch in range(c):
                sel[e, (2 * j + e) * c + ch, (j + pad) * c + ch] = 1.0
    return sel


# ----------------------------------------------------------------------------
# Fused Pallas kernel: Conv3x3+BN+ReLU+Pool  ->  Conv3x3+BN+ReLU+Pool
# Grid = (N,): one 16x16x3 image per step, everything stays in VMEM/vregs.
# ----------------------------------------------------------------------------
def _convnet_fused_kernel(x_ref, w1_ref, s1_ref, b1_ref, selh1_ref, selw1_ref,
                          w2_ref, s2_ref, b2_ref, selh2_ref, selw2_ref,
                          o_ref, y_scr):
    # x_ref:   (1, 18, 54)   padded image, rows = padded H, cols = (padded W, Cin)
    # w1_ref:  (3, 54, 128)  banded block-1 conv weights (per kh)
    # s1/b1:   (1, 128)      folded BN scale / shift tiled over the wide layout
    # selh1:   (2, 16, 16)   pool-1 row selections (+ zero-pad rows)
    # selw1:   (2, 128, 80)  pool-1 col selections (+ zero-pad cols)
    # w2_ref:  (3, 80, 128)  banded block-2 conv weights
    # selh2:   (2, 8, 8)     pool-2 row selections
    # selw2:   (2, 128, 64)  pool-2 col selections
    # o_ref:   (1, 8, 64)    rows 0..3 = pooled block-2 output [h', w'*16 + c]
    # y_scr:   (16, 80)      VMEM scratch: padded block-2 input (rows 0..9 used)

    # ---- block 1: conv3x3 (3 wide matmuls) + folded BN + ReLU ----
    acc1 = jnp.zeros((16, 128), jnp.float32)
    for kh in range(3):
        lhs = x_ref[0, pl.ds(kh, 16), :]                            # (16, 54)
        acc1 = acc1 + jnp.dot(lhs, w1_ref[kh, :, :],
                              preferred_element_type=jnp.float32)
    act1 = jnp.maximum(acc1 * s1_ref[...] + b1_ref[...], 0.0)       # (16, 128)

    # ---- 2x2 max-pool + zero-pad, rearranged into block-2 wide layout ----
    h0 = jnp.dot(selh1_ref[0, :, :], act1, preferred_element_type=jnp.float32)
    h1 = jnp.dot(selh1_ref[1, :, :], act1, preferred_element_type=jnp.float32)
    hmax = jnp.maximum(h0, h1)                                      # (16, 128)
    p0 = jnp.dot(hmax, selw1_ref[0, :, :], preferred_element_type=jnp.float32)
    p1 = jnp.dot(hmax, selw1_ref[1, :, :], preferred_element_type=jnp.float32)
    y_scr[...] = jnp.maximum(p0, p1)                                # (16, 80)

    # ---- block 2: conv3x3 (3 wide matmuls) + folded BN + ReLU ----
    acc2 = jnp.zeros((8, 128), jnp.float32)
    for kh in range(3):
        lhs2 = y_scr[pl.ds(kh, 8), :]                               # (8, 80)
        acc2 = acc2 + jnp.dot(lhs2, w2_ref[kh, :, :],
                              preferred_element_type=jnp.float32)
    act2 = jnp.maximum(acc2 * s2_ref[...] + b2_ref[...], 0.0)       # (8, 128)

    # ---- 2x2 max-pool -> (h', w'*16 + c) ----
    c0 = jnp.dot(selh2_ref[0, :, :], act2, preferred_element_type=jnp.float32)
    c1 = jnp.dot(selh2_ref[1, :, :], act2, preferred_element_type=jnp.float32)
    hmax2 = jnp.maximum(c0, c1)                                     # (8, 128)
    d0 = jnp.dot(hmax2, selw2_ref[0, :, :], preferred_element_type=jnp.float32)
    d1 = jnp.dot(hmax2, selw2_ref[1, :, :], preferred_element_type=jnp.float32)
    o_ref[0, :, :] = jnp.maximum(d0, d1)                            # (8, 64)


@jax.jit
def _feature_forward(kp, x_nchw):
    n, c, h, w = x_nchw.shape
    assert (c, h, w) == (3, 16, 16), "backbone is configured for 3x16x16 inputs"
    # Input layout plumbing (one fused XLA op on a KB-sized tensor):
    # NCHW -> NHWC -> spatial zero-pad -> wide rows (H_pad, W_pad*Cin).
    x = jnp.transpose(x_nchw.astype(jnp.float32), (0, 2, 3, 1))     # (N,16,16,3)
    xp = jnp.pad(x, ((0, 0), (1, 1), (1, 1), (0, 0)))               # (N,18,18,3)
    xw = xp.reshape(n, 18, 18 * 3)                                  # (N,18,54)

    out = pl.pallas_call(
        _convnet_fused_kernel,
        out_shape=jax.ShapeDtypeStruct((n, 8, 64), jnp.float32),
        grid=(n,),
        in_specs=[
            pl.BlockSpec((1, 18, 54), lambda i: (i, 0, 0)),
            pl.BlockSpec((3, 54, 128), lambda i: (0, 0, 0)),
            pl.BlockSpec((1, 128), lambda i: (0, 0)),
            pl.BlockSpec((1, 128), lambda i: (0, 0)),
            pl.BlockSpec((2, 16, 16), lambda i: (0, 0, 0)),
            pl.BlockSpec((2, 128, 80), lambda i: (0, 0, 0)),
            pl.BlockSpec((3, 80, 128), lambda i: (0, 0, 0)),
            pl.BlockSpec((1, 128), lambda i: (0, 0)),
            pl.BlockSpec((1, 128), lambda i: (0, 0)),
            pl.BlockSpec((2, 8, 8), lambda i: (0, 0, 0)),
            pl.BlockSpec((2, 128, 64), lambda i: (0, 0, 0)),
        ],
        out_specs=pl.BlockSpec((1, 8, 64), lambda i: (i, 0, 0)),
        scratch_shapes=[pltpu.VMEM((16, 80), jnp.float32)],
        compiler_params=pltpu.CompilerParams(
            dimension_semantics=("parallel",)),
    )(xw, kp["w1w"], kp["s1w"], kp["b1w"], kp["selh1"], kp["selw1"],
      kp["w2w"], kp["s2w"], kp["b2w"], kp["selh2"], kp["selw2"])

    # out[:, :4, :] has layout [n, h', w'*16 + c]; flatten in NCHW order so
    # the result matches torch's `.view(N, -1)` on a (N, 16, 4, 4) feature map.
    feats = out[:, :4, :].reshape(n, 4, 4, 16).transpose(0, 3, 1, 2)
    return feats.reshape(n, -1)


# ----------------------------------------------------------------------------
# Deterministic ConvNet backbone (the `model_func()` feature extractor)
# ----------------------------------------------------------------------------
class ConvNetFeaturePallas:
    def __init__(self, key=None):
        key = jax.random.PRNGKey(0) if key is None else key
        k = jax.random.split(key, 12)
        eps = 1e-5
        c1i, c1o, c2i, c2o = 3, 8, 8, 16

        def f32(v):
            return v.astype(jnp.float32)

        # block 1 params (conv bias + BatchNorm in eval mode)
        self.w1 = f32(0.2 * jax.random.normal(k[0], (3, 3, c1i, c1o)))
        self.b1 = f32(0.1 * jax.random.normal(k[1], (c1o,)))
        self.g1 = f32(1.0 + 0.1 * jax.random.normal(k[2], (c1o,)))
        self.beta1 = f32(0.05 * jax.random.normal(k[3], (c1o,)))
        self.mu1 = f32(0.1 * jax.random.normal(k[4], (c1o,)))
        self.var1 = f32(1.0 + 0.2 * jax.nn.sigmoid(jax.random.normal(k[5], (c1o,))))
        # block 2 params
        self.w2 = f32(0.1 * jax.random.normal(k[6], (3, 3, c2i, c2o)))
        self.b2 = f32(0.1 * jax.random.normal(k[7], (c2o,)))
        self.g2 = f32(1.0 + 0.1 * jax.random.normal(k[8], (c2o,)))
        self.beta2 = f32(0.05 * jax.random.normal(k[9], (c2o,)))
        self.mu2 = f32(0.1 * jax.random.normal(k[10], (c2o,)))
        self.var2 = f32(1.0 + 0.2 * jax.nn.sigmoid(jax.random.normal(k[11], (c2o,))))

        # fold conv bias + BN into per-channel scale/shift
        self.scale1 = self.g1 / jnp.sqrt(self.var1 + eps)
        self.shift1 = self.beta1 + (self.b1 - self.mu1) * self.scale1
        self.scale2 = self.g2 / jnp.sqrt(self.var2 + eps)
        self.shift2 = self.beta2 + (self.b2 - self.mu2) * self.scale2

        # for 16x16 spatial input: 16 -> 8 -> 4
        self.final_feat_dim = c2o * 4 * 4   # 256

        # --- precomputed kernel constants (wide weights, pooling selections) ---
        w1_np = np.asarray(self.w1, np.float32)
        w2_np = np.asarray(self.w2, np.float32)
        self._kparams = dict(
            w1w=jnp.asarray(_build_wide_conv_weight(w1_np, 18, 16)),        # (3,54,128)
            s1w=jnp.asarray(np.tile(np.asarray(self.scale1), 16).reshape(1, 128)),
            b1w=jnp.asarray(np.tile(np.asarray(self.shift1), 16).reshape(1, 128)),
            selh1=jnp.asarray(_build_pool_row_select(16, 8, 1, 16)),        # (2,16,16)
            selw1=jnp.asarray(_build_pool_col_select(16, 8, 8, 1)),         # (2,128,80)
            w2w=jnp.asarray(_build_wide_conv_weight(w2_np, 10, 8)),         # (3,80,128)
            s2w=jnp.asarray(np.tile(np.asarray(self.scale2), 8).reshape(1, 128)),
            b2w=jnp.asarray(np.tile(np.asarray(self.shift2), 8).reshape(1, 128)),
            selh2=jnp.asarray(_build_pool_row_select(8, 4, 0, 8)),          # (2,8,8)
            selw2=jnp.asarray(_build_pool_col_select(8, 4, 16, 0)),         # (2,128,64)
        )

    def forward(self, x_nchw):
        return _feature_forward(self._kparams, x_nchw)


# ----------------------------------------------------------------------------
# MetaTemplate (forward + parse_feature semantics of the PyTorch module)
# ----------------------------------------------------------------------------
class MetaTemplate:
    def __init__(self, model_func, n_way, n_support, change_way=True):
        self.n_way = n_way
        self.n_support = n_support
        self.n_query = -1
        self.feature = model_func()
        self.feat_dim = self.feature.final_feat_dim
        self.change_way = change_way

    def forward(self, x):
        return self.feature.forward(x)

    def parse_feature(self, x, is_feature):
        if is_feature:
            z_all = x
        else:
            xr = x.reshape((self.n_way * (self.n_support + self.n_query),) + x.shape[2:])
            z_all = self.feature.forward(xr)
            z_all = z_all.reshape(self.n_way, self.n_support + self.n_query, -1)
        z_support = z_all[:, : self.n_support]
        z_query = z_all[:, self.n_support:]
        return z_support, z_query

    # TODO(synk): set_forward / set_forward_loss are abstract in the reference;
    # correct / train_loop / test_loop / set_forward_adaptation are host-side
    # training & evaluation loops (optimizers, tqdm) with no kernel equivalent.


# ----------------------------------------------------------------------------
# Pure-JAX reference of the backbone for correctness checking
# ----------------------------------------------------------------------------
def ref_feature_forward(feat, x_nchw):
    x = jnp.transpose(x_nchw.astype(jnp.float32), (0, 2, 3, 1))

    def block(xv, wv, bv, gv, bev, muv, varv):
        y = lax.conv_general_dilated(
            xv, wv, (1, 1), "SAME",
            dimension_numbers=("NHWC", "HWIO", "NHWC"),
            precision=lax.Precision.HIGHEST)
        y = y + bv
        y = (y - muv) * gv / jnp.sqrt(varv + 1e-5) + bev
        y = jnp.maximum(y, 0.0)
        y = lax.reduce_window(y, -jnp.inf, lax.max, (1, 2, 2, 1), (1, 2, 2, 1), "VALID")
        return y

    h = block(x, feat.w1, feat.b1, feat.g1, feat.beta1, feat.mu1, feat.var1)
    h = block(h, feat.w2, feat.b2, feat.g2, feat.beta2, feat.mu2, feat.var2)
    h = jnp.transpose(h, (0, 3, 1, 2))
    return h.reshape(h.shape[0], -1)


if __name__ == "__main__":
    n_way, n_support, n_query = 2, 2, 2
    model = MetaTemplate(lambda: ConvNetFeaturePallas(jax.random.PRNGKey(0)),
                         n_way=n_way, n_support=n_support)
    model.n_query = n_query

    key = jax.random.PRNGKey(0)
    # episode tensor: (n_way, n_support + n_query, C, H, W)
    x = jax.random.normal(key, (n_way, n_support + n_query, 3, 16, 16), jnp.float32)
    x_flat = x.reshape(-1, 3, 16, 16)

    # forward() — the whole backbone runs in one fused Pallas kernel
    out = jax.block_until_ready(model.forward(x_flat))
    assert out.shape == (n_way * (n_support + n_query), model.feat_dim), out.shape

    # check against a pure-JAX reference
    ref = jax.block_until_ready(ref_feature_forward(model.feature, x_flat))
    max_err = float(jnp.max(jnp.abs(out - ref)))
    assert max_err < 1e-2, f"mismatch vs reference: {max_err}"

    # exercise parse_feature (support/query split of Pallas-computed features)
    z_support, z_query = model.parse_feature(x, is_feature=False)
    jax.block_until_ready((z_support, z_query))
    assert z_support.shape == (n_way, n_support, model.feat_dim)
    assert z_query.shape == (n_way, n_query, model.feat_dim)

    print("KERNEL_OK")
</pallas_src>

<mosaic_0001>
module attributes {stable_mosaic.version = 11 : i64} {
  func.func @_convnet_fused_kernel(%arg0: i32, %arg1: memref<1x18x54xf32, #tpu.memory_space<vmem>>, %arg2: memref<3x54x128xf32, #tpu.memory_space<vmem>>, %arg3: memref<1x128xf32, #tpu.memory_space<vmem>>, %arg4: memref<1x128xf32, #tpu.memory_space<vmem>>, %arg5: memref<2x16x16xf32, #tpu.memory_space<vmem>>, %arg6: memref<2x128x80xf32, #tpu.memory_space<vmem>>, %arg7: memref<3x80x128xf32, #tpu.memory_space<vmem>>, %arg8: memref<1x128xf32, #tpu.memory_space<vmem>>, %arg9: memref<1x128xf32, #tpu.memory_space<vmem>>, %arg10: memref<2x8x8xf32, #tpu.memory_space<vmem>>, %arg11: memref<2x128x64xf32, #tpu.memory_space<vmem>>, %arg12: memref<1x8x64xf32, #tpu.memory_space<vmem>>, %arg13: memref<16x80xf32, #tpu.memory_space<vmem>>) attributes {dimension_semantics = [#tpu.dimension_semantics<parallel>], iteration_bounds = array<i64: 8>, scalar_prefetch = 0 : i64, scratch_operands = 1 : i64, tpu.core_type = #tpu.core_type<tc>, window_params = [{transform_indices = @transform_0, window_bounds = array<i64: 1, 18, 54>}, {pipeline_mode = #tpu.pipeline_mode<synchronous>, transform_indices = @transform_1, window_bounds = array<i64: 3, 54, 128>}, {pipeline_mode = #tpu.pipeline_mode<synchronous>, transform_indices = @transform_2, window_bounds = array<i64: 1, 128>}, {pipeline_mode = #tpu.pipeline_mode<synchronous>, transform_indices = @transform_3, window_bounds = array<i64: 1, 128>}, {pipeline_mode = #tpu.pipeline_mode<synchronous>, transform_indices = @transform_4, window_bounds = array<i64: 2, 16, 16>}, {pipeline_mode = #tpu.pipeline_mode<synchronous>, transform_indices = @transform_5, window_bounds = array<i64: 2, 128, 80>}, {pipeline_mode = #tpu.pipeline_mode<synchronous>, transform_indices = @transform_6, window_bounds = array<i64: 3, 80, 128>}, {pipeline_mode = #tpu.pipeline_mode<synchronous>, transform_indices = @transform_7, window_bounds = array<i64: 1, 128>}, {pipeline_mode = #tpu.pipeline_mode<synchronous>, transform_indices = @transform_8, window_bounds = array<i64: 1, 128>}, {pipeline_mode = #tpu.pipeline_mode<synchronous>, transform_indices = @transform_9, window_bounds = array<i64: 2, 8, 8>}, {pipeline_mode = #tpu.pipeline_mode<synchronous>, transform_indices = @transform_10, window_bounds = array<i64: 2, 128, 64>}, {transform_indices = @transform_11, window_bounds = array<i64: 1, 8, 64>}]} {
    %cst = arith.constant 0.000000e+00 : f32
    %0 = vector.broadcast %cst : f32 to vector<16x128xf32>
    %c0 = arith.constant 0 : index
    %c0_0 = arith.constant 0 : index
    %c0_1 = arith.constant 0 : index
    %1 = vector.load %arg1[%c0, %c0_0, %c0_1] : memref<1x18x54xf32, #tpu.memory_space<vmem>>, vector<1x16x54xf32>
    %2 = vector.shape_cast %1 : vector<1x16x54xf32> to vector<16x54xf32>
    %c0_2 = arith.constant 0 : index
    %c0_3 = arith.constant 0 : index
    %c0_4 = arith.constant 0 : index
    %3 = vector.load %arg2[%c0_2, %c0_3, %c0_4] : memref<3x54x128xf32, #tpu.memory_space<vmem>>, vector<1x54x128xf32>
    %4 = vector.shape_cast %3 : vector<1x54x128xf32> to vector<54x128xf32>
    %cst_5 = arith.constant dense<0.000000e+00> : vector<16x128xf32>
    %5 = tpu.matmul %2, %4, %cst_5 {dimension_numbers = #tpu.dot_dimension_numbers<[1], [0], [0], [1], [0, 0, 1, 1], [], []>} : vector<16x54xf32>, vector<54x128xf32>, vector<16x128xf32> -> vector<16x128xf32>
    %6 = arith.addf %0, %5 : vector<16x128xf32>
    %c0_6 = arith.constant 0 : index
    %c1 = arith.constant 1 : index
    %c0_7 = arith.constant 0 : index
    %7 = vector.load %arg1[%c0_6, %c1, %c0_7] : memref<1x18x54xf32, #tpu.memory_space<vmem>>, vector<1x16x54xf32>
    %8 = vector.shape_cast %7 : vector<1x16x54xf32> to vector<16x54xf32>
    %c1_8 = arith.constant 1 : index
    %c0_9 = arith.constant 0 : index
    %c0_10 = arith.constant 0 : index
    %9 = vector.load %arg2[%c1_8, %c0_9, %c0_10] : memref<3x54x128xf32, #tpu.memory_space<vmem>>, vector<1x54x128xf32>
    %10 = vector.shape_cast %9 : vector<1x54x128xf32> to vector<54x128xf32>
    %cst_11 = arith.constant dense<0.000000e+00> : vector<16x128xf32>
    %11 = tpu.matmul %8, %10, %cst_11 {dimension_numbers = #tpu.dot_dimension_numbers<[1], [0], [0], [1], [0, 0, 1, 1], [], []>} : vector<16x54xf32>, vector<54x128xf32>, vector<16x128xf32> -> vector<16x128xf32>
    %12 = arith.addf %6, %11 : vector<16x128xf32>
    %c0_12 = arith.constant 0 : index
    %c2 = arith.constant 2 : index
    %c0_13 = arith.constant 0 : index
    %13 = vector.load %arg1[%c0_12, %c2, %c0_13] : memref<1x18x54xf32, #tpu.memory_space<vmem>>, vector<1x16x54xf32>
    %14 = vector.shape_cast %13 : vector<1x16x54xf32> to vector<16x54xf32>
    %c2_14 = arith.constant 2 : index
    %c0_15 = arith.constant 0 : index
    %c0_16 = arith.constant 0 : index
    %15 = vector.load %arg2[%c2_14, %c0_15, %c0_16] : memref<3x54x128xf32, #tpu.memory_space<vmem>>, vector<1x54x128xf32>
    %16 = vector.shape_cast %15 : vector<1x54x128xf32> to vector<54x128xf32>
    %cst_17 = arith.constant dense<0.000000e+00> : vector<16x128xf32>
    %17 = tpu.matmul %14, %16, %cst_17 {dimension_numbers = #tpu.dot_dimension_numbers<[1], [0], [0], [1], [0, 0, 1, 1], [], []>} : vector<16x54xf32>, vector<54x128xf32>, vector<16x128xf32> -> vector<16x128xf32>
    %18 = arith.addf %12, %17 : vector<16x128xf32>
    %c0_18 = arith.constant 0 : index
    %c0_19 = arith.constant 0 : index
    %19 = vector.load %arg3[%c0_18, %c0_19] : memref<1x128xf32, #tpu.memory_space<vmem>>, vector<1x128xf32>
    %20 = vector.broadcast %19 : vector<1x128xf32> to vector<16x128xf32>
    %21 = arith.mulf %18, %20 : vector<16x128xf32>
    %c0_20 = arith.constant 0 : index
    %c0_21 = arith.constant 0 : index
    %22 = vector.load %arg4[%c0_20, %c0_21] : memref<1x128xf32, #tpu.memory_space<vmem>>, vector<1x128xf32>
    %23 = vector.broadcast %22 : vector<1x128xf32> to vector<16x128xf32>
    %24 = arith.addf %21, %23 : vector<16x128xf32>
    %cst_22 = arith.constant 0.000000e+00 : f32
    %25 = vector.broadcast %cst_22 : f32 to vector<16x128xf32>
    %26 = arith.maximumf %24, %25 : vector<16x128xf32>
    %c0_23 = arith.constant 0 : index
    %c0_24 = arith.constant 0 : index
    %c0_25 = arith.constant 0 : index
    %27 = vector.load %arg5[%c0_23, %c0_24, %c0_25] : memref<2x16x16xf32, #tpu.memory_space<vmem>>, vector<1x16x16xf32>
    %28 = vector.shape_cast %27 : vector<1x16x16xf32> to vector<16x16xf32>
    %cst_26 = arith.constant dense<0.000000e+00> : vector<16x128xf32>
    %29 = tpu.matmul %28, %26, %cst_26 {dimension_numbers = #tpu.dot_dimension_numbers<[1], [0], [0], [1], [0, 0, 1, 1], [], []>} : vector<16x16xf32>, vector<16x128xf32>, vector<16x128xf32> -> vector<16x128xf32>
    %c1_27 = arith.constant 1 : index
    %c0_28 = arith.constant 0 : index
    %c0_29 = arith.constant 0 : index
    %30 = vector.load %arg5[%c1_27, %c0_28, %c0_29] : memref<2x16x16xf32, #tpu.memory_space<vmem>>, vector<1x16x16xf32>
    %31 = vector.shape_cast %30 : vector<1x16x16xf32> to vector<16x16xf32>
    %cst_30 = arith.constant dense<0.000000e+00> : vector<16x128xf32>
    %32 = tpu.matmul %31, %26, %cst_30 {dimension_numbers = #tpu.dot_dimension_numbers<[1], [0], [0], [1], [0, 0, 1, 1], [], []>} : vector<16x16xf32>, vector<16x128xf32>, vector<16x128xf32> -> vector<16x128xf32>
    %33 = arith.maximumf %29, %32 : vector<16x128xf32>
    %c0_31 = arith.constant 0 : index
    %c0_32 = arith.constant 0 : index
    %c0_33 = arith.constant 0 : index
    %34 = vector.load %arg6[%c0_31, %c0_32, %c0_33] : memref<2x128x80xf32, #tpu.memory_space<vmem>>, vector<1x128x80xf32>
    %35 = vector.shape_cast %34 : vector<1x128x80xf32> to vector<128x80xf32>
    %cst_34 = arith.constant dense<0.000000e+00> : vector<16x80xf32>
    %36 = tpu.matmul %33, %35, %cst_34 {dimension_numbers = #tpu.dot_dimension_numbers<[1], [0], [0], [1], [0, 0, 1, 1], [], []>} : vector<16x128xf32>, vector<128x80xf32>, vector<16x80xf32> -> vector<16x80xf32>
    %c1_35 = arith.constant 1 : index
    %c0_36 = arith.constant 0 : index
    %c0_37 = arith.constant 0 : index
    %37 = vector.load %arg6[%c1_35, %c0_36, %c0_37] : memref<2x128x80xf32, #tpu.memory_space<vmem>>, vector<1x128x80xf32>
    %38 = vector.shape_cast %37 : vector<1x128x80xf32> to vector<128x80xf32>
    %cst_38 = arith.constant dense<0.000000e+00> : vector<16x80xf32>
    %39 = tpu.matmul %33, %38, %cst_38 {dimension_numbers = #tpu.dot_dimension_numbers<[1], [0], [0], [1], [0, 0, 1, 1], [], []>} : vector<16x128xf32>, vector<128x80xf32>, vector<16x80xf32> -> vector<16x80xf32>
    %40 = arith.maximumf %36, %39 : vector<16x80xf32>
    %c0_39 = arith.constant 0 : index
    %c0_40 = arith.constant 0 : index
    %41 = vector.load %arg13[%c0_39, %c0_40] : memref<16x80xf32, #tpu.memory_space<vmem>>, vector<16x80xf32>
    tpu.vector_store %arg13[%c0_39, %c0_40], %40 {strides = array<i32>} : memref<16x80xf32, #tpu.memory_space<vmem>>, vector<16x80xf32>,
    %cst_41 = arith.constant 0.000000e+00 : f32
    %42 = vector.broadcast %cst_41 : f32 to vector<8x128xf32>
    %c0_42 = arith.constant 0 : index
    %c0_43 = arith.constant 0 : index
    %43 = vector.load %arg13[%c0_42, %c0_43] : memref<16x80xf32, #tpu.memory_space<vmem>>, vector<8x80xf32>
    %c0_44 = arith.constant 0 : index
    %c0_45 = arith.constant 0 : index
    %c0_46 = arith.constant 0 : index
    %44 = vector.load %arg7[%c0_44, %c0_45, %c0_46] : memref<3x80x128xf32, #tpu.memory_space<vmem>>, vector<1x80x128xf32>
    %45 = vector.shape_cast %44 : vector<1x80x128xf32> to vector<80x128xf32>
    %cst_47 = arith.constant dense<0.000000e+00> : vector<8x128xf32>
    %46 = tpu.matmul %43, %45, %cst_47 {dimension_numbers = #tpu.dot_dimension_numbers<[1], [0], [0], [1], [0, 0, 1, 1], [], []>} : vector<8x80xf32>, vector<80x128xf32>, vector<8x128xf32> -> vector<8x128xf32>
    %47 = arith.addf %42, %46 : vector<8x128xf32>
    %c1_48 = arith.constant 1 : index
    %c0_49 = arith.constant 0 : index
    %48 = vector.load %arg13[%c1_48, %c0_49] : memref<16x80xf32, #tpu.memory_space<vmem>>, vector<8x80xf32>
    %c1_50 = arith.constant 1 : index
    %c0_51 = arith.constant 0 : index
    %c0_52 = arith.constant 0 : index
    %49 = vector.load %arg7[%c1_50, %c0_51, %c0_52] : memref<3x80x128xf32, #tpu.memory_space<vmem>>, vector<1x80x128xf32>
    %50 = vector.shape_cast %49 : vector<1x80x128xf32> to vector<80x128xf32>
    %cst_53 = arith.constant dense<0.000000e+00> : vector<8x128xf32>
    %51 = tpu.matmul %48, %50, %cst_53 {dimension_numbers = #tpu.dot_dimension_numbers<[1], [0], [0], [1], [0, 0, 1, 1], [], []>} : vector<8x80xf32>, vector<80x128xf32>, vector<8x128xf32> -> vector<8x128xf32>
    %52 = arith.addf %47, %51 : vector<8x128xf32>
    %c2_54 = arith.constant 2 : index
    %c0_55 = arith.constant 0 : index
    %53 = vector.load %arg13[%c2_54, %c0_55] : memref<16x80xf32, #tpu.memory_space<vmem>>, vector<8x80xf32>
    %c2_56 = arith.constant 2 : index
    %c0_57 = arith.constant 0 : index
    %c0_58 = arith.constant 0 : index
    %54 = vector.load %arg7[%c2_56, %c0_57, %c0_58] : memref<3x80x128xf32, #tpu.memory_space<vmem>>, vector<1x80x128xf32>
    %55 = vector.shape_cast %54 : vector<1x80x128xf32> to vector<80x128xf32>
    %cst_59 = arith.constant dense<0.000000e+00> : vector<8x128xf32>
    %56 = tpu.matmul %53, %55, %cst_59 {dimension_numbers = #tpu.dot_dimension_numbers<[1], [0], [0], [1], [0, 0, 1, 1], [], []>} : vector<8x80xf32>, vector<80x128xf32>, vector<8x128xf32> -> vector<8x128xf32>
    %57 = arith.addf %52, %56 : vector<8x128xf32>
    %c0_60 = arith.constant 0 : index
    %c0_61 = arith.constant 0 : index
    %58 = vector.load %arg8[%c0_60, %c0_61] : memref<1x128xf32, #tpu.memory_space<vmem>>, vector<1x128xf32>
    %59 = vector.broadcast %58 : vector<1x128xf32> to vector<8x128xf32>
    %60 = arith.mulf %57, %59 : vector<8x128xf32>
    %c0_62 = arith.constant 0 : index
    %c0_63 = arith.constant 0 : index
    %61 = vector.load %arg9[%c0_62, %c0_63] : memref<1x128xf32, #tpu.memory_space<vmem>>, vector<1x128xf32>
    %62 = vector.broadcast %61 : vector<1x128xf32> to vector<8x128xf32>
    %63 = arith.addf %60, %62 : vector<8x128xf32>
    %cst_64 = arith.constant 0.000000e+00 : f32
    %64 = vector.broadcast %cst_64 : f32 to vector<8x128xf32>
    %65 = arith.maximumf %63, %64 : vector<8x128xf32>
    %c0_65 = arith.constant 0 : index
    %c0_66 = arith.constant 0 : index
    %c0_67 = arith.constant 0 : index
    %66 = vector.load %arg10[%c0_65, %c0_66, %c0_67] : memref<2x8x8xf32, #tpu.memory_space<vmem>>, vector<1x8x8xf32>
    %67 = vector.shape_cast %66 : vector<1x8x8xf32> to vector<8x8xf32>
    %cst_68 = arith.constant dense<0.000000e+00> : vector<8x128xf32>
    %68 = tpu.matmul %67, %65, %cst_68 {dimension_numbers = #tpu.dot_dimension_numbers<[1], [0], [0], [1], [0, 0, 1, 1], [], []>} : vector<8x8xf32>, vector<8x128xf32>, vector<8x128xf32> -> vector<8x128xf32>
    %c1_69 = arith.constant 1 : index
    %c0_70 = arith.constant 0 : index
    %c0_71 = arith.constant 0 : index
    %69 = vector.load %arg10[%c1_69, %c0_70, %c0_71] : memref<2x8x8xf32, #tpu.memory_space<vmem>>, vector<1x8x8xf32>
    %70 = vector.shape_cast %69 : vector<1x8x8xf32> to vector<8x8xf32>
    %cst_72 = arith.constant dense<0.000000e+00> : vector<8x128xf32>
    %71 = tpu.matmul %70, %65, %cst_72 {dimension_numbers = #tpu.dot_dimension_numbers<[1], [0], [0], [1], [0, 0, 1, 1], [], []>} : vector<8x8xf32>, vector<8x128xf32>, vector<8x128xf32> -> vector<8x128xf32>
    %72 = arith.maximumf %68, %71 : vector<8x128xf32>
    %c0_73 = arith.constant 0 : index
    %c0_74 = arith.constant 0 : index
    %c0_75 = arith.constant 0 : index
    %73 = vector.load %arg11[%c0_73, %c0_74, %c0_75] : memref<2x128x64xf32, #tpu.memory_space<vmem>>, vector<1x128x64xf32>
    %74 = vector.shape_cast %73 : vector<1x128x64xf32> to vector<128x64xf32>
    %cst_76 = arith.constant dense<0.000000e+00> : vector<8x64xf32>
    %75 = tpu.matmul %72, %74, %cst_76 {dimension_numbers = #tpu.dot_dimension_numbers<[1], [0], [0], [1], [0, 0, 1, 1], [], []>} : vector<8x128xf32>, vector<128x64xf32>, vector<8x64xf32> -> vector<8x64xf32>
    %c1_77 = arith.constant 1 : index
    %c0_78 = arith.constant 0 : index
    %c0_79 = arith.constant 0 : index
    %76 = vector.load %arg11[%c1_77, %c0_78, %c0_79] : memref<2x128x64xf32, #tpu.memory_space<vmem>>, vector<1x128x64xf32>
    %77 = vector.shape_cast %76 : vector<1x128x64xf32> to vector<128x64xf32>
    %cst_80 = arith.constant dense<0.000000e+00> : vector<8x64xf32>
    %78 = tpu.matmul %72, %77, %cst_80 {dimension_numbers = #tpu.dot_dimension_numbers<[1], [0], [0], [1], [0, 0, 1, 1], [], []>} : vector<8x128xf32>, vector<128x64xf32>, vector<8x64xf32> -> vector<8x64xf32>
    %79 = arith.maximumf %75, %78 : vector<8x64xf32>
    %c0_81 = arith.constant 0 : index
    %c0_82 = arith.constant 0 : index
    %c0_83 = arith.constant 0 : index
    %80 = vector.load %arg12[%c0_81, %c0_82, %c0_83] : memref<1x8x64xf32, #tpu.memory_space<vmem>>, vector<1x8x64xf32>
    %81 = vector.shape_cast %80 : vector<1x8x64xf32> to vector<8x64xf32>
    %82 = vector.shape_cast %79 : vector<8x64xf32> to vector<1x8x64xf32>
    tpu.vector_store %arg12[%c0_81, %c0_82, %c0_83], %82 {strides = array<i32>} : memref<1x8x64xf32, #tpu.memory_space<vmem>>, vector<1x8x64xf32>,
    return
  }
  func.func @transform_0(%arg0: i32) -> (i32, i32, i32) {
    %c0_i32 = arith.constant 0 : i32
    %c0_i32_0 = arith.constant 0 : i32
    %c0_i32_1 = arith.constant 0 : i32
    return %arg0, %c0_i32, %c0_i32_0 : i32, i32, i32
  }
  func.func @transform_1(%arg0: i32) -> (i32, i32, i32) {
    %c0_i32 = arith.constant 0 : i32
    %c0_i32_0 = arith.constant 0 : i32
    %c0_i32_1 = arith.constant 0 : i32
    %c0_i32_2 = arith.constant 0 : i32
    return %c0_i32, %c0_i32_0, %c0_i32_1 : i32, i32, i32
  }
  func.func @transform_2(%arg0: i32) -> (i32, i32) {
    %c0_i32 = arith.constant 0 : i32
    %c0_i32_0 = arith.constant 0 : i32
    %c0_i32_1 = arith.constant 0 : i32
    return %c0_i32, %c0_i32_0 : i32, i32
  }
  func.func @transform_3(%arg0: i32) -> (i32, i32) {
    %c0_i32 = arith.constant 0 : i32
    %c0_i32_0 = arith.constant 0 : i32
    %c0_i32_1 = arith.constant 0 : i32
    return %c0_i32, %c0_i32_0 : i32, i32
  }
  func.func @transform_4(%arg0: i32) -> (i32, i32, i32) {
    %c0_i32 = arith.constant 0 : i32
    %c0_i32_0 = arith.constant 0 : i32
    %c0_i32_1 = arith.constant 0 : i32
    %c0_i32_2 = arith.constant 0 : i32
    return %c0_i32, %c0_i32_0, %c0_i32_1 : i32, i32, i32
  }
  func.func @transform_5(%arg0: i32) -> (i32, i32, i32) {
    %c0_i32 = arith.constant 0 : i32
    %c0_i32_0 = arith.constant 0 : i32
    %c0_i32_1 = arith.constant 0 : i32
    %c0_i32_2 = arith.constant 0 : i32
    return %c0_i32, %c0_i32_0, %c0_i32_1 : i32, i32, i32
  }
  func.func @transform_6(%arg0: i32) -> (i32, i32, i32) {
    %c0_i32 = arith.constant 0 : i32
    %c0_i32_0 = arith.constant 0 : i32
    %c0_i32_1 = arith.constant 0 : i32
    %c0_i32_2 = arith.constant 0 : i32
    return %c0_i32, %c0_i32_0, %c0_i32_1 : i32, i32, i32
  }
  func.func @transform_7(%arg0: i32) -> (i32, i32) {
    %c0_i32 = arith.constant 0 : i32
    %c0_i32_0 = arith.constant 0 : i32
    %c0_i32_1 = arith.constant 0 : i32
    return %c0_i32, %c0_i32_0 : i32, i32
  }
  func.func @transform_8(%arg0: i32) -> (i32, i32) {
    %c0_i32 = arith.constant 0 : i32
    %c0_i32_0 = arith.constant 0 : i32
    %c0_i32_1 = arith.constant 0 : i32
    return %c0_i32, %c0_i32_0 : i32, i32
  }
  func.func @transform_9(%arg0: i32) -> (i32, i32, i32) {
    %c0_i32 = arith.constant 0 : i32
    %c0_i32_0 = arith.constant 0 : i32
    %c0_i32_1 = arith.constant 0 : i32
    %c0_i32_2 = arith.constant 0 : i32
    return %c0_i32, %c0_i32_0, %c0_i32_1 : i32, i32, i32
  }
  func.func @transform_10(%arg0: i32) -> (i32, i32, i32) {
    %c0_i32 = arith.constant 0 : i32
    %c0_i32_0 = arith.constant 0 : i32
    %c0_i32_1 = arith.constant 0 : i32
    %c0_i32_2 = arith.constant 0 : i32
    return %c0_i32, %c0_i32_0, %c0_i32_1 : i32, i32, i32
  }
  func.func @transform_11(%arg0: i32) -> (i32, i32, i32) {
    %c0_i32 = arith.constant 0 : i32
    %c0_i32_0 = arith.constant 0 : i32
    %c0_i32_1 = arith.constant 0 : i32
    return %arg0, %c0_i32, %c0_i32_0 : i32, i32, i32
  }
}

</mosaic_0001>

<bundles_post_ra>
// kernel: _feature_forward.1
= control target key start
LH: loop header
LB: loop body
LE: loop exit
PB: predicated region body
PF: predicated region fallthrough
CT: control target
= control target key end

     0   :  { %s1151_s17 = smov 0   ;;  %s1568_s0 = inlined_call_operand.vmem [shape: f32[8,18,54], index: 0, kind: input, shape index: {}]   ;;  %s1569_s1 = inlined_call_operand.vmem [shape: f32[3,54,128], index: 1, kind: input, shape index: {}]   ;;  %s1570_s2 = inlined_call_operand.vmem [shape: f32[1,128], index: 2, kind: input, shape index: {}]   ;;  %s1571_s3 = inlined_call_operand.vmem [shape: f32[1,128], index: 3, kind: input, shape index: {}]   ;;  %s1572_s4 = inlined_call_operand.vmem [shape: f32[2,16,16], index: 4, kind: input, shape index: {}]   ;;  %s1573_s5 = inlined_call_operand.vmem [shape: f32[2,128,80], index: 5, kind: input, shape index: {}]   ;;  %s1574_s6 = inlined_call_operand.vmem [shape: f32[3,80,128], index: 6, kind: input, shape index: {}]   ;;  %s1575_s7 = inlined_call_operand.vmem [shape: f32[1,128], index: 7, kind: input, shape index: {}]   ;;  %s1576_s8 = inlined_call_operand.vmem [shape: f32[1,128], index: 8, kind: input, shape index: {}]   ;;  %s1577_s9 = inlined_call_operand.vmem [shape: f32[2,8,8], index: 9, kind: input, shape index: {}]   ;;  %s1578_s10 = inlined_call_operand.vmem [shape: f32[2,128,64], index: 10, kind: input, shape index: {}]   ;;  %s1579_s11 = inlined_call_operand.vmem [shape: f32[8,8,64], index: 11, kind: output, shape index: {}]  }
   0x1 LB: > { %s974_s18 = sadd.s32 4294967295, %s1089_s17   ;;  %p978_p0 = scmp.ge.s32.totalorder %s1089_s17, 1  ;;  %s1089_s17 = sphi %s1151_s17, %s21_s17  }
   0x2   : > { %p337_p1 = scmp.lt.s32.totalorder %s1089_s17, 9 }
   0x4   : > { %p338_p2 = pnand %p978_p0, %p337_p1 }
   0x5   : > { %p376_p3 = scmp.lt.s32.totalorder (!%p338_p2), %s974_s18, 7 }
   0x6   : > { %341 = sbr.rel (%p338_p2) target bundleno = 906 (0x38a), region = 64 }
   0xb   : > { %v987_v0 = vld [vmem:[%s1569_s1 + $0x68] sm:$0x3f]  ;;  %vm411_vm0 = vcmask 1045504   ;;  %v986_v1 = vld [vmem:[%s1569_s1 + $0x60] sm:$0xff]  ;;  %v393_v2 = vld [vmem:[%s1569_s1 + $0x30] sm:$0x3f] }
   0xc   : > { %988 = vmatpush.msk.msra.mxu2 %vm411_vm0, %v987_v0  ;;  %v985_v3 = vld [vmem:[%s1569_s1 + $0x58] sm:$0xff]  ;;  %991 = vmatpush.msk.msra.mxu1 %vm411_vm0, %v393_v2  ;;  %v392_v4 = vld [vmem:[%s1569_s1 + $0x28] sm:$0xff]  ;;  %s1581_s18 = smov (!%p376_p3, %s974_s18), 7  ;;  %v391_v5 = vld [vmem:[%s1569_s1 + $0x20] sm:$0xff]  ;;  %vm404_vm1 = vcmask 441344   ;;  %vm530_vm2 = vcmask 130048  }
   0xd   : > { %v984_v6 = vld [vmem:[%s1569_s1 + $0x50] sm:$0xff]  ;;  %s1070_s14 = smul.u32 24, %s1581_s18  ;;  %v390_v7 = vld [vmem:[%s1569_s1 + $0x18] sm:$0xff]  ;;  %v983_v8 = vld [vmem:[%s1569_s1 + $0x48] sm:$0xff]  ;;  %vm675_vm3 = vcmask 654336   ;;  %vm795_vm4 = vcmask 64512  }
   0xe   : > { %425 = vmatpush.msra.mxu2 %v986_v1  ;;  %457 = vmatpush.msra.mxu1 %v392_v4  ;;  %v389_v9 = vld [vmem:[%s1569_s1 + $0x10] sm:$0xff]  ;;  %v982_v10 = vld [vmem:[%s1569_s1 + $0x40] sm:$0xff]  ;;  %v388_v11 = vld [vmem:[%s1569_s1 + $0x8] sm:$0xff]  ;;  %vm919_vm5 = vcmask 523264  }
   0xf   : > { %s1200_s27 = scalar_lea.vmem %s1568_s0, %s1070_s14  ;;  %v981_v12 = vld [vmem:[%s1569_s1 + $0x38] sm:$0xff]  ;;  %v387_v14 = vld [vmem:[%s1569_s1] sm:$0xff]  ;;  %v998_v18 = vld [vmem:[%s1569_s1 + $0x90] sm:$0xff] }
  0x10   : > { %426 = vmatpush.msra.mxu2 %v985_v3  ;;  %458 = vmatpush.msra.mxu1 %v391_v5  ;;  %v394_v13 = vld [vmem:[%s1200_s27 + $0x1] sm:$0xff]  ;;  %v999_v17 = vld [vmem:[%s1569_s1 + $0x98] sm:$0xff]  ;;  %v395_v20 = vld [vmem:[%s1200_s27 + $0x9] sm:$0xff] }
  0x11   : > { %v1000_v15 = vld [vmem:[%s1569_s1 + $0xa0] sm:$0x3f]  ;;  %v997_v19 = vld [vmem:[%s1569_s1 + $0x88] sm:$0xff]  ;;  %v995_v23 = vld [vmem:[%s1569_s1 + $0x78] sm:$0xff] }
  0x12   : > { %427 = vmatpush.msra.mxu2 %v984_v6  ;;  %459 = vmatpush.msra.mxu1 %v390_v7  ;;  %v385_v16 = vld [vmem:[%s1200_s27] sm:$0xff]  ;;  %v386_v22 = vld [vmem:[%s1200_s27 + $0x8] sm:$0xff]  ;;  %v994_v24 = vld [vmem:[%s1569_s1 + $0x70] sm:$0xff] }
  0x13   : > { %v996_v21 = vld [vmem:[%s1569_s1 + $0x80] sm:$0xff]  ;;  %v471_v26 = vld [vmem:[%s1200_s27 + $0xa] sm:$0xff]  ;;  %v609_v41 = vld [vmem:[%s1573_s5 + $0x78] sm:$0xff] }
  0x14   : > { %428 = vmatpush.msra.mxu2 %v983_v8  ;;  %460 = vmatpush.msra.mxu1 %v389_v9  ;;  %v470_v25 = vld [vmem:[%s1200_s27 + $0x2] sm:$0xff]  ;;  %v1079_v34 = vld [vmem:[%s1570_s2] ss:$0 sm:$0xff]  ;;  %v1025_v42 = vld [vmem:[%s1573_s5 + $0xf8] sm:$0xff]  ;;  %s980_s27 = sshll.u32 %s1581_s18, 3 }
  0x15   : > { %v1080_v39 = vld [vmem:[%s1571_s3] ss:$0 sm:$0xff]  ;;  %v608_v43 = vld [vmem:[%s1573_s5 + $0x70] sm:$0xff]  ;;  %610 = vmatpush.msra.mxu0 %v609_v41  ;;  %v607_v47 = vld [vmem:[%s1573_s5 + $0x68] sm:$0xff]  ;;  %s384_s21 = scalar_lea.vmem %s1579_s11, %s980_s27 }
  0x16   : > { %429 = vmatpush.msra.mxu2 %v982_v10  ;;  %461 = vmatpush.msra.mxu1 %v388_v11  ;;  %v1024_v46 = vld [vmem:[%s1573_s5 + $0xf0] sm:$0xff]  ;;  %v1023_v49 = vld [vmem:[%s1573_s5 + $0xe8] sm:$0xff]  ;;  %v606_v50 = vld [vmem:[%s1573_s5 + $0x60] sm:$0xff] }
  0x17   : > { %611 = vmatpush.msra.mxu0 %v608_v43  ;;  %v528_v52 = vld [vmem:[%s1572_s4] sm:$0xff]  ;;  %v605_v54 = vld [vmem:[%s1573_s5 + $0x58] sm:$0xff]  ;;  %v604_v56 = vld [vmem:[%s1573_s5 + $0x50] sm:$0xff] }
  0x18   : > { %430 = vmatpush.msra.mxu2 %v981_v12  ;;  %462 = vmatpush.msra.mxu1 %v387_v14  ;;  %v1022_v53 = vld [vmem:[%s1573_s5 + $0xe0] sm:$0xff]  ;;  %v1021_v55 = vld [vmem:[%s1573_s5 + $0xd8] sm:$0xff]  ;;  %v1020_v57 = vld [vmem:[%s1573_s5 + $0xd0] sm:$0xff] }
  0x19   : > { %989 = vmatmul.msk.f32.vlgmr.msra.gmra.mxu2 %vm404_vm1, %v394_v13  ;;  %992 = vmatmul.msk.f32.vlgmr.msra.gmra.mxu1 %vm404_vm1, %v385_v16  ;;  %v529_v58 = vld [vmem:[%s1572_s4 + $0x8] sm:$0xff]  ;;  %v1006_v59 = vld [vmem:[%s1572_s4 + $0x10] sm:$0xff]  ;;  %v1007_v60 = vld [vmem:[%s1572_s4 + $0x18] sm:$0xff] }
  0x1a   : > { %1001 = vmatpush.msk.msrb.mxu2 %vm411_vm0, %v1000_v15  ;;  %650 = vmatpush.msrb.mxu1 %v1025_v42  ;;  %v603_v61 = vld [vmem:[%s1573_s5 + $0x48] sm:$0xff]  ;;  %v602_v63 = vld [vmem:[%s1573_s5 + $0x40] sm:$0xff]  ;;  %v601_v1 = vld [vmem:[%s1573_s5 + $0x38] sm:$0xff] }
  0x1b   : > { %612 = vmatpush.msra.mxu0 %v607_v47  ;;  %v1019_v62 = vld [vmem:[%s1573_s5 + $0xc8] sm:$0xff]  ;;  %v1018_v0 = vld [vmem:[%s1573_s5 + $0xc0] sm:$0xff]  ;;  %v1017_v2 = vld [vmem:[%s1573_s5 + $0xb8] sm:$0xff] }
  0x1c   : > { %499 = vmatpush.msrb.mxu2 %v999_v17  ;;  %651 = vmatpush.msrb.mxu1 %v1024_v46  ;;  %v600_v3 = vld [vmem:[%s1573_s5 + $0x30] sm:$0xff]  ;;  %v599_v5 = vld [vmem:[%s1573_s5 + $0x28] sm:$0xff]  ;;  %v598_v7 = vld [vmem:[%s1573_s5 + $0x20] sm:$0xff] }
  0x1d   : > { %613 = vmatpush.msra.mxu0 %v606_v50  ;;  %v1016_v4 = vld [vmem:[%s1573_s5 + $0xb0] sm:$0xff]  ;;  %v1015_v6 = vld [vmem:[%s1573_s5 + $0xa8] sm:$0xff]  ;;  %v1014_v8 = vld [vmem:[%s1573_s5 + $0xa0] sm:$0xff] }
  0x1e   : > { %500 = vmatpush.msrb.mxu2 %v998_v18  ;;  %652 = vmatpush.msrb.mxu1 %v1023_v49  ;;  %v597_v9 = vld [vmem:[%s1573_s5 + $0x18] sm:$0xff]  ;;  %v596_v11 = vld [vmem:[%s1573_s5 + $0x10] sm:$0xff]  ;;  %v595_v13 = vld [vmem:[%s1573_s5 + $0x8] sm:$0xff] }
  0x1f   : > { %614 = vmatpush.msra.mxu0 %v605_v54  ;;  %v1013_v10 = vld [vmem:[%s1573_s5 + $0x98] sm:$0xff]  ;;  %v1012_v12 = vld [vmem:[%s1573_s5 + $0x90] sm:$0xff]  ;;  %v1011_v14 = vld [vmem:[%s1573_s5 + $0x88] sm:$0xff] }
  0x20   : > { %501 = vmatpush.msrb.mxu2 %v997_v19  ;;  %653 = vmatpush.msrb.mxu1 %v1022_v53  ;;  %v594_v15 = vld [vmem:[%s1573_s5] sm:$0xff]  ;;  %v1035_v17 = vld [vmem:[%s1574_s6 + $0x98] sm:$0xff]  ;;  %v1034_v18 = vld [vmem:[%s1574_s6 + $0x90] sm:$0xff] }
  0x21   : > { %990 = vmatmul.msk.f32.gmra.mxu2 %vm404_vm1, %v395_v20  ;;  %993 = vmatmul.msk.f32.gmra.mxu1 %vm404_vm1, %v386_v22  ;;  %v1010_v16 = vld [vmem:[%s1573_s5 + $0x80] sm:$0xff]  ;;  %v688_v19 = vld [vmem:[%s1574_s6 + $0x48] sm:$0xff]  ;;  %v686_v22 = vld [vmem:[%s1574_s6 + $0x38] sm:$0xff] }
  0x22   : > { %502 = vmatpush.msrb.mxu2 %v996_v21  ;;  %654 = vmatpush.msrb.mxu1 %v1021_v55  ;;  %v687_v20 = vld [vmem:[%s1574_s6 + $0x40] sm:$0xff]  ;;  %v1033_v21 = vld [vmem:[%s1574_s6 + $0x88] sm:$0xff]  ;;  %v1044_v46 = vld [vmem:[%s1574_s6 + $0xd0] sm:$0xff] }
  0x23   : > { %615 = vmatpush.msra.mxu0 %v604_v56  ;;  %v680_v41 = vld [vmem:[%s1574_s6 + $0x8] sm:$0xff]  ;;  %v679_v43 = vld [vmem:[%s1574_s6] sm:$0xff]  ;;  %v1041_v49 = vld [vmem:[%s1574_s6 + $0xb8] sm:$0xff] }
  0x24   : > { %503 = vmatpush.msrb.mxu2 %v995_v23  ;;  %655 = vmatpush.msrb.mxu1 %v1020_v57  ;;  %v1032_v23 = vld [vmem:[%s1574_s6 + $0x80] sm:$0xff]  ;;  %v1047_v42 = vld [vmem:[%s1574_s6 + $0xe8] sm:$0xff]  ;;  %v1040_v50 = vld [vmem:[%s1574_s6 + $0xb0] sm:$0xff] }
  0x25   : > { %616 = vmatpush.msra.mxu0 %v603_v61  ;;  %v1043_v47 = vld [vmem:[%s1574_s6 + $0xc8] sm:$0xff] }
  0x26   : > { %504 = vmatpush.msrb.mxu2 %v994_v24  ;;  %656 = vmatpush.msrb.mxu1 %v1019_v62  ;;  %v685_v24 = vld [vmem:[%s1574_s6 + $0x30] sm:$0xff]  ;;  %v860_v62 = vld [vmem:[%s1578_s10 + $0x78] sm:$0xff] }
  0x27   : > { %617 = vmatpush.msra.mxu0 %v602_v63  ;;  %v1067_v63 = vld [vmem:[%s1578_s10 + $0xf8] sm:$0xff] }
  0x28   : > { %657 = vmatpush.msrb.mxu1 %v1018_v0  ;;  %710 = vmatpush.msra.mxu2 %v1035_v17  ;;  %v859_v0 = vld [vmem:[%s1578_s10 + $0x70] sm:$0xff]  ;;  %v1081_v17 = vld [vmem:[%s1575_s7] ss:$0 sm:$0xff] }
  0x29   : > { %1002 = vmatmul.msk.f32.vlgmr.msrb.gmra.mxu2 %vm404_vm1, %v470_v25  ;;  %618 = vmatpush.msra.mxu0 %v601_v1  ;;  %v1066_v1 = vld [vmem:[%s1578_s10 + $0xf0] sm:$0xff] }
  0x2a   : > { %658 = vmatpush.msrb.mxu1 %v1017_v2  ;;  %711 = vmatpush.msra.mxu2 %v1034_v18  ;;  %v858_v2 = vld [vmem:[%s1578_s10 + $0x68] sm:$0xff] }
  0x2b   : > { %619 = vmatpush.msra.mxu0 %v600_v3  ;;  %v1065_v3 = vld [vmem:[%s1578_s10 + $0xe8] sm:$0xff] }
  0x2c   : > { %659 = vmatpush.msrb.mxu1 %v1016_v4  ;;  %712 = vmatpush.msra.mxu2 %v1033_v21  ;;  %v857_v4 = vld [vmem:[%s1578_s10 + $0x60] sm:$0xff] }
  0x2d   : > { %620 = vmatpush.msra.mxu0 %v599_v5  ;;  %v1064_v5 = vld [vmem:[%s1578_s10 + $0xe0] sm:$0xff] }
  0x2e   : > { %660 = vmatpush.msrb.mxu1 %v1015_v6  ;;  %713 = vmatpush.msra.mxu2 %v1032_v23  ;;  %v851_v23 = vld [vmem:[%s1578_s10 + $0x30] sm:$0xff] }
  0x2f   : > { %621 = vmatpush.msra.mxu0 %v598_v7  ;;  %v856_v7 = vld [vmem:[%s1578_s10 + $0x58] sm:$0xff] }
  0x30   : > { %661 = vmatpush.msrb.mxu1 %v1014_v8  ;;  %v1063_v8 = vld [vmem:[%s1578_s10 + $0xd8] sm:$0xff] }
  0x31   : > { %1003 = vmatmul.msk.f32.gmra.mxu2 %vm404_vm1, %v471_v26  ;;  %622 = vmatpush.msra.mxu0 %v597_v9  ;;  %v1031_v26 = vld [vmem:[%s1574_s6 + $0x78] sm:$0xff]  ;;  %v855_v9 = vld [vmem:[%s1578_s10 + $0x50] sm:$0xff] }
  0x32   : > { %662 = vmatpush.msrb.mxu1 %v1013_v10  ;;  %714 = vmatpush.msra.mxu2 %v1031_v26  ;;  %v1062_v10 = vld [vmem:[%s1578_s10 + $0xd0] sm:$0xff] }
  0x33   : > { %623 = vmatpush.msra.mxu0 %v596_v11  ;;  %v854_v11 = vld [vmem:[%s1578_s10 + $0x48] sm:$0xff] }
  0x34   : > { %663 = vmatpush.msrb.mxu1 %v1012_v12  ;;  %v1061_v12 = vld [vmem:[%s1578_s10 + $0xc8] sm:$0xff] }
  0x35   : > { %624 = vmatpush.msra.mxu0 %v595_v13 }
  0x36   : > { %664 = vmatpush.msrb.mxu1 %v1011_v14  ;;  %v853_v14 = vld [vmem:[%s1578_s10 + $0x40] sm:$0xff] }
  0x37   : > { %625 = vmatpush.msra.mxu0 %v594_v15  ;;  %v1060_v15 = vld [vmem:[%s1578_s10 + $0xc0] sm:$0xff] }
  0x38   : > { %665 = vmatpush.msrb.mxu1 %v1010_v16 }
  0x39   : > { %861 = vmatpush.msrb.mxu0 %v860_v62 }
  0x3a   : > { %898 = vmatpush.msra.mxu1 %v1067_v63 }
  0x3b   : > { %862 = vmatpush.msrb.mxu0 %v859_v0 }
  0x3c   : > { %899 = vmatpush.msra.mxu1 %v1066_v1 }
  0x3d   : > { %863 = vmatpush.msrb.mxu0 %v858_v2 }
  0x3e   : > { %900 = vmatpush.msra.mxu1 %v1065_v3 }
  0x3f   : > { %864 = vmatpush.msrb.mxu0 %v857_v4 }
  0x40   : > { %901 = vmatpush.msra.mxu1 %v1064_v5 }
  0x41   : > { %865 = vmatpush.msrb.mxu0 %v856_v7 }
  0x42   : > { %902 = vmatpush.msra.mxu1 %v1063_v8 }
  0x43   : > { %866 = vmatpush.msrb.mxu0 %v855_v9 }
  0x44   : > { %903 = vmatpush.msra.mxu1 %v1062_v10 }
  0x45   : > { %867 = vmatpush.msrb.mxu0 %v854_v11 }
  0x46   : > { %904 = vmatpush.msra.mxu1 %v1061_v12 }
  0x47   : > { %868 = vmatpush.msrb.mxu0 %v853_v14 }
  0x48   : > { %905 = vmatpush.msra.mxu1 %v1060_v15 }
  0x96   : > { %v464_v29 = vpop.f32.mrf.mxu1 }
  0x9c   : > { %v432_v27 = vpop.f32.mrf.mxu2 }
  0x9d   : > { %v465_v31 = vadd.f32 %v464_v29, %v432_v27  ;;  %v1030_v27 = vld [vmem:[%s1574_s6 + $0x70] sm:$0xff] }
  0x9e   : > { %v467_v32 = vpop.f32.mrf.mxu1  ;;  %715 = vmatpush.msra.mxu2 %v1030_v27 }
  0xa4   : > { %v435_v28 = vpop.f32.mrf.mxu2 }
  0xa5   : > { %v468_v35 = vadd.f32 %v467_v32, %v435_v28 }
  0xac   : > { %v506_v30 = vpop.f32.mrf.mxu2 }
  0xad   : > { %v512_v33 = vadd.f32 %v506_v30, %v465_v31 }
  0xaf   : > { %v518_v37 = vmul.f32 %v1079_v34, %v512_v33  ;;  %v684_v33 = vld [vmem:[%s1574_s6 + $0x28] sm:$0xff] }
  0xb1   : > { %v524_v45 = vadd.f32 %v1080_v39, %v518_v37  ;;  %v682_v37 = vld [vmem:[%s1574_s6 + $0x18] sm:$0xff] }
  0xb3   : > { %v526_v51 = vmax.f32 %v524_v45, 0.0  ;;  %v1045_v45 = vld [vmem:[%s1574_s6 + $0xd8] sm:$0xff] }
  0xb4   : > { %v509_v36 = vpop.f32.mrf.mxu2 }
  0xb5   : > { %v513_v38 = vadd.f32 %v509_v36, %v468_v35  ;;  %v683_v35 = vld [vmem:[%s1574_s6 + $0x20] sm:$0xff] }
  0xb6   : > { %v1028_v36 = vld [vmem:[%s1574_s6 + $0x60] sm:$0xff] }
  0xb7   : > { %v519_v40 = vmul.f32 %v1079_v34, %v513_v38  ;;  %v1029_v34 = vld [vmem:[%s1574_s6 + $0x68] sm:$0xff]  ;;  %v1027_v38 = vld [vmem:[%s1574_s6 + $0x58] sm:$0xff] }
  0xb8   : > { %716 = vmatpush.msra.mxu2 %v1029_v34  ;;  %v848_v34 = vld [vmem:[%s1578_s10 + $0x18] sm:$0xff] }
  0xb9   : > { %v525_v44 = vadd.f32 %v1080_v39, %v519_v40  ;;  %v681_v39 = vld [vmem:[%s1574_s6 + $0x10] sm:$0xff] }
  0xba   : > { %717 = vmatpush.msra.mxu2 %v1028_v36  ;;  %v1026_v40 = vld [vmem:[%s1574_s6 + $0x50] sm:$0xff] }
  0xbb   : > { %v527_v48 = vmax.f32 %v525_v44, 0.0  ;;  %v1046_v44 = vld [vmem:[%s1574_s6 + $0xe0] sm:$0xff]  ;;  %v847_v36 = vld [vmem:[%s1578_s10 + $0x10] sm:$0xff] }
  0xbc   : > { %718 = vmatpush.msra.mxu2 %v1027_v38  ;;  %v846_v38 = vld [vmem:[%s1578_s10 + $0x8] sm:$0xff] }
  0xbd   : > { %551 = vmatpush.msra.mxu3 %v527_v48 }
  0xbe   : > { %719 = vmatpush.msra.mxu2 %v1026_v40  ;;  %v845_v40 = vld [vmem:[%s1578_s10] sm:$0xff] }
  0xbf   : > { %552 = vmatpush.msra.mxu3 %v526_v51 }
  0xc0   : > { %1004 = vmatmul.msk.f32.vlgmr.msra.gmra.mxu3 %vm530_vm2, %v528_v52  ;;  %768 = vmatpush.msrb.mxu2 %v1047_v42  ;;  %v1038_v52 = vld [vmem:[%s1574_s6 + $0xa0] sm:$0xff] }
  0xc1   : > { %583 = vmatpush.msrb.mxu3 %v527_v48  ;;  %v1042_v48 = vld [vmem:[%s1574_s6 + $0xc0] sm:$0xff] }
  0xc2   : > { %769 = vmatpush.msrb.mxu2 %v1046_v44 }
  0xc3   : > { %584 = vmatpush.msrb.mxu3 %v526_v51  ;;  %v1039_v51 = vld [vmem:[%s1574_s6 + $0xa8] sm:$0xff] }
  0xc4   : > { %770 = vmatpush.msrb.mxu2 %v1045_v45 }
  0xc5   : > { %733 = vmatpush.msra.mxu3 %v688_v19  ;;  %v852_v19 = vld [vmem:[%s1578_s10 + $0x38] sm:$0xff] }
  0xc6   : > { %771 = vmatpush.msrb.mxu2 %v1044_v46  ;;  %869 = vmatpush.msrb.mxu0 %v852_v19 }
  0xc7   : > { %734 = vmatpush.msra.mxu3 %v687_v20  ;;  %v1059_v20 = vld [vmem:[%s1578_s10 + $0xb8] sm:$0xff] }
  0xc8   : > { %1005 = vmatmul.msk.f32.gmra.mxu3 %vm530_vm2, %v529_v58  ;;  %772 = vmatpush.msrb.mxu2 %v1043_v47 }
  0xc9   : > { %735 = vmatpush.msra.mxu3 %v686_v22  ;;  %v1082_v22 = vld [vmem:[%s1576_s8] ss:$0 sm:$0xff]  ;;  %906 = vmatpush.msra.mxu1 %v1059_v20 }
  0xca   : > { %773 = vmatpush.msrb.mxu2 %v1042_v48  ;;  %870 = vmatpush.msrb.mxu0 %v851_v23 }
  0xcb   : > { %736 = vmatpush.msra.mxu3 %v685_v24  ;;  %v1058_v24 = vld [vmem:[%s1578_s10 + $0xb0] sm:$0xff] }
  0xcc   : > { %774 = vmatpush.msrb.mxu2 %v1041_v49  ;;  %907 = vmatpush.msra.mxu1 %v1058_v24 }
  0xcd   : > { %737 = vmatpush.msra.mxu3 %v684_v33  ;;  %v1056_v33 = vld [vmem:[%s1578_s10 + $0xa0] sm:$0xff] }
  0xce   : > { %775 = vmatpush.msrb.mxu2 %v1040_v50 }
  0xcf   : > { %738 = vmatpush.msra.mxu3 %v683_v35  ;;  %v1055_v35 = vld [vmem:[%s1578_s10 + $0x98] sm:$0xff] }
  0xd0   : > { %1008 = vmatmul.msk.f32.vlgmr.msrb.gmra.mxu3 %vm530_vm2, %v1006_v59  ;;  %776 = vmatpush.msrb.mxu2 %v1039_v51 }
  0xd1   : > { %739 = vmatpush.msra.mxu3 %v682_v37  ;;  %v1054_v37 = vld [vmem:[%s1578_s10 + $0x90] sm:$0xff] }
  0xd2   : > { %777 = vmatpush.msrb.mxu2 %v1038_v52 }
  0xd3   : > { %740 = vmatpush.msra.mxu3 %v681_v39  ;;  %v1053_v39 = vld [vmem:[%s1578_s10 + $0x88] sm:$0xff] }
  0xd5   : > { %741 = vmatpush.msra.mxu3 %v680_v41  ;;  %v1052_v41 = vld [vmem:[%s1578_s10 + $0x80] sm:$0xff] }
  0xd7   : > { %742 = vmatpush.msra.mxu3 %v679_v43 }
  0xd8   : > { %1009 = vmatmul.msk.f32.gmra.mxu3 %vm530_vm2, %v1007_v60 }
 0x143   : > { %v554_v25 = vpop.f32.mrf.mxu3 }
 0x14b   : > { %v557_v28 = vpop.f32.mrf.mxu3 }
 0x153   : > { %v586_v29 = vpop.f32.mrf.mxu3 }
 0x154   : > { %v592_v30 = vmax.f32 %v554_v25, %v586_v29  ;;  %v1050_v29 = vld [vmem:[%s1577_s9 + $0x8] sm:$0xff] }
 0x156   : > { %626 = vmatmul.f32.vlgmr.msra.gmra.mxu0 %v592_v30  ;;  %666 = vmatmul.f32.vlgmr.msrb.gmra.mxu1 %v592_v30  ;;  %v850_v30 = vld [vmem:[%s1578_s10 + $0x28] sm:$0xff] }
 0x157   : > { %871 = vmatpush.msrb.mxu0 %v850_v30 }
 0x15b   : > { %v589_v31 = vpop.f32.mrf.mxu3 }
 0x15c   : > { %v593_v32 = vmax.f32 %v557_v28, %v589_v31  ;;  %v794_v28 = vld [vmem:[%s1577_s9] sm:$0xff]  ;;  %v1057_v31 = vld [vmem:[%s1578_s10 + $0xa8] sm:$0xff] }
 0x15d   : > { %908 = vmatpush.msra.mxu1 %v1057_v31 }
 0x15e   : > { %629 = vmatmul.f32.gmra.mxu0 %v593_v32  ;;  %669 = vmatmul.f32.gmra.mxu1 %v593_v32  ;;  %v849_v32 = vld [vmem:[%s1578_s10 + $0x20] sm:$0xff] }
 0x15f   : > { %872 = vmatpush.msrb.mxu0 %v849_v32  ;;  %909 = vmatpush.msra.mxu1 %v1056_v33 }
 0x161   : > { %873 = vmatpush.msrb.mxu0 %v848_v34  ;;  %910 = vmatpush.msra.mxu1 %v1055_v35 }
 0x163   : > { %874 = vmatpush.msrb.mxu0 %v847_v36  ;;  %911 = vmatpush.msra.mxu1 %v1054_v37 }
 0x165   : > { %875 = vmatpush.msrb.mxu0 %v846_v38  ;;  %912 = vmatpush.msra.mxu1 %v1053_v39 }
 0x167   : > { %876 = vmatpush.msrb.mxu0 %v845_v40  ;;  %913 = vmatpush.msra.mxu1 %v1052_v41 }
 0x1d3   : > { %v627_v53 = vpop.f32.mrf.mxu0  ;;  %v667_v54 = vpop.f32.mrf.mxu1 }
 0x1d4   : > { %v673_v55 = vmax.f32 %v627_v53, %v667_v54 }
 0x1d6   : > { %676 = vst.msk [vmem:[#allocation2] sm:$0xff] %vm675_vm3, %v673_v55 }
 0x1db   : > { %v630_v56 = vpop.f32.mrf.mxu0  ;;  %v670_v57 = vpop.f32.mrf.mxu1 }
 0x1dc   : > { %v674_v58 = vmax.f32 %v630_v56, %v670_v57 }
 0x1dd   : > { %v678_v59 = vld [vmem:[#allocation2] sm:$0xff] }
 0x1de   : > { %677 = vst.msk [vmem:[#allocation2 + $0x8] sm:$0xff] %vm675_vm3, %v674_v58  ;;  %1037 = vmatmul.msk.f32.vlgmr.msra.gmra.mxu3 %vm675_vm3, %v678_v59 }
 0x1e5   : > { %v689_v60 = vld [vmem:[#allocation2 + $0x1] sm:$0xff] }
 0x1e6   : > { %1036 = vmatmul.msk.f32.vlgmr.msra.gmra.mxu2 %vm675_vm3, %v689_v60  ;;  %v747_v61 = vld [vmem:[#allocation2 + $0x2] sm:$0xff] }
 0x1ee   : > { %1048 = vmatmul.msk.f32.vlgmr.msrb.gmra.mxu2 %vm675_vm3, %v747_v61 }
 0x261   : > { %v744_v13 = vpop.f32.mrf.mxu3 }
 0x269   : > { %v721_v6 = vpop.f32.mrf.mxu2 }
 0x26a   : > { %v745_v16 = vadd.f32 %v744_v13, %v721_v6 }
 0x271   : > { %v779_v18 = vpop.f32.mrf.mxu2 }
 0x272   : > { %v782_v21 = vadd.f32 %v779_v18, %v745_v16 }
 0x274   : > { %v787_v25 = vmul.f32 %v1081_v17, %v782_v21 }
 0x276   : > { %v792_v26 = vadd.f32 %v1082_v22, %v787_v25 }
 0x278   : > { %v793_v27 = vmax.f32 %v792_v26, 0.0 }
 0x27a   : > { %814 = vmatpush.msrb.mxu3 %v793_v27 }
 0x27b   : > { %1049 = vmatmul.msk.f32.vlgmr.msrb.gmra.mxu3 %vm795_vm4, %v794_v28 }
 0x27c   : > { %839 = vmatpush.msra.mxu3 %v793_v27 }
 0x283   : > { %1051 = vmatmul.msk.f32.vlgmr.msra.gmra.mxu3 %vm795_vm4, %v1050_v29 }
 0x2fe   : > { %v816_v42 = vpop.f32.mrf.mxu3 }
 0x306   : > { %v841_v43 = vpop.f32.mrf.mxu3 }
 0x307   : > { %v844_v44 = vmax.f32 %v816_v42, %v841_v43 }
 0x309   : > { %877 = vmatmul.f32.vlgmr.msrb.gmra.mxu0 %v844_v44  ;;  %914 = vmatmul.f32.vlgmr.msra.gmra.mxu1 %v844_v44 }
 0x386   : > { %v878_v45 = vpop.f32.mrf.mxu0  ;;  %v915_v46 = vpop.f32.mrf.mxu1 }
 0x387   : > { %v918_v47 = vmax.f32 %v878_v45, %v915_v46 }
 0x389   : > { %920 = vst.msk [vmem:[%s384_s21] sm:$0xff] %vm919_vm5, %v918_v47 }
 0x38a PF: > { %s21_s17 = sadd.s32 1, %s1089_s17  }
 0x38b   : > { %p18_p4 = scmp.ge.s32.totalorder %s21_s17, 10  }
 0x38d   :  { %20 = sbr.rel (!%p18_p4) target bundleno = 1 (0x1), region = 102 }

</bundles_post_ra>
